<compile_context>
chip_gen: v7x
topology: tpu7x:2x2x1
jax: 0.10.0
libtpu: 0.0.40
codegen_flags: <defaults>
</compile_context>

<pallas_src>
import functools
import math

import numpy as np
import jax
import jax.numpy as jnp
from jax.experimental import pallas as pl
from jax.experimental.pallas import tpu as pltpu

LN_EPS = 1e-5  # torch.nn.LayerNorm default


# --------------------------------------------------------------------------- helpers
def _round_up(v, m):
    return ((v + m - 1) // m) * m


def _vmem_budget_bytes():
    """Generation-aware VMEM budget with headroom for Mosaic internal scratch."""
    cap = 64 * 1024 * 1024
    try:
        info = pltpu.get_tpu_info()
        cap = int(getattr(info, "vmem_capacity_bytes", cap))
    except Exception:
        pass
    # 16 MiB headroom; never ask for more than ~112 MiB even on 128 MiB parts.
    return max(32 * 1024 * 1024, min(cap - 16 * 1024 * 1024, 112 * 1024 * 1024))


def _pick_tile_b(batch, per_row, fixed, budget, requested, min_tile):
    avail = max(budget - fixed, per_row * min_tile)
    cap_rows = max(min_tile, (avail // per_row) // min_tile * min_tile)
    tb = min(_round_up(requested, min_tile), _round_up(batch, min_tile), int(cap_rows))
    return max(min_tile, tb)


def _split_for_megacore(batch, tile_b, min_tile):
    """Guarantee >=2 batch tiles when possible so v7x's two TensorCores both work."""
    b_pad = _round_up(batch, tile_b)
    if b_pad // tile_b < 2 and tile_b >= 2 * min_tile:
        tile_b = _round_up(tile_b // 2, min_tile)
        b_pad = _round_up(batch, tile_b)
    return tile_b, b_pad


def _pick_tile_k(k_pad, n_pad, w_item, budget, max_tile_k=None):
    """Largest 128-aligned divisor of k_pad whose double-buffered weight slab fits."""
    limit = int(budget * 0.4)
    for tk in (k_pad, 4096, 2048, 1024, 512, 256, 128):
        if max_tile_k is not None and tk > max_tile_k:
            continue
        if tk <= k_pad and k_pad % tk == 0 and 2 * tk * n_pad * w_item <= limit:
            return tk
    return 128


def _ln_relu(y, gamma, beta, inv_n, pad_cnt):
    """Two-pass LayerNorm + ReLU on a zero-padded (rows, n_pad) f32 tile.

    Padded lanes of y are exactly zero (zero weight columns / bias), so the centered
    sum of squares only needs a scalar pad_cnt * mean^2 correction — no lane mask.
    Padded gamma/beta are zero, so padded output lanes stay zero.
    """
    mean = jnp.sum(y, axis=-1, keepdims=True) * inv_n
    c = y - mean
    var = (jnp.sum(c * c, axis=-1, keepdims=True) - pad_cnt * (mean * mean)) * inv_n
    var = jnp.maximum(var, 0.0)
    z = c * jax.lax.rsqrt(var + LN_EPS)
    z = z * gamma + beta
    return jnp.maximum(z, 0.0)


# --------------------------------------------------------------- fused whole-block path
def _fused_block_kernel(inv_n_ref, pad_cnt_ref, x_ref, w_ref, b_ref, g_ref, bt_ref,
                        o_ref, act_ref, *, outermost_linear):
    l = pl.program_id(1)
    last = l == pl.num_programs(1) - 1

    @pl.when(l == 0)
    def _():
        act_ref[...] = x_ref[...].astype(act_ref.dtype)

    y = jnp.dot(act_ref[...], w_ref[...], preferred_element_type=jnp.float32)
    y = y + b_ref[...].astype(jnp.float32)

    inv_n = inv_n_ref[l]
    pad_cnt = pad_cnt_ref[l]

    if outermost_linear:
        @pl.when(jnp.logical_not(last))
        def _():
            z = _ln_relu(y, g_ref[...].astype(jnp.float32),
                         bt_ref[...].astype(jnp.float32), inv_n, pad_cnt)
            act_ref[...] = z.astype(act_ref.dtype)

        @pl.when(last)
        def _():
            o_ref[...] = y.astype(o_ref.dtype)
    else:
        z = _ln_relu(y, g_ref[...].astype(jnp.float32),
                     bt_ref[...].astype(jnp.float32), inv_n, pad_cnt)

        @pl.when(jnp.logical_not(last))
        def _():
            act_ref[...] = z.astype(act_ref.dtype)

        @pl.when(last)
        def _():
            o_ref[...] = z.astype(o_ref.dtype)


def _fc_block_fused_call(xp, prep, tile_b, b_pad, out_dtype, budget):
    d_max = prep["d_max"]
    W, Bv, G, BT = prep["W"], prep["B"], prep["G"], prep["BT"]
    n_layers = W.shape[0]
    cdtype = prep["compute_dtype"]
    c_item = jnp.dtype(cdtype).itemsize
    o_item = jnp.dtype(out_dtype).itemsize
    grid = (b_pad // tile_b, n_layers)

    need = (2 * tile_b * d_max * c_item          # x tiles (double-buffered)
            + 2 * d_max * d_max * c_item         # per-layer weight slabs
            + 6 * d_max * 4                      # bias / gamma / beta
            + 2 * tile_b * d_max * o_item        # output tiles
            + tile_b * d_max * c_item)           # resident activation scratch
    vmem_limit = int(min(budget, max(32 * 1024 * 1024, int(need * 1.25))))

    cost = pl.CostEstimate(
        flops=int(2 * b_pad * d_max * d_max * n_layers),
        transcendentals=int(b_pad * n_layers),
        bytes_accessed=int(b_pad * d_max * (c_item + o_item)
                           + (b_pad // tile_b) * n_layers * d_max * d_max * c_item
                           + n_layers * 3 * d_max * 4))

    kernel = functools.partial(_fused_block_kernel,
                               outermost_linear=prep["outermost_linear"])

    return pl.pallas_call(
        kernel,
        out_shape=jax.ShapeDtypeStruct((b_pad, d_max), out_dtype),
        grid_spec=pltpu.PrefetchScalarGridSpec(
            num_scalar_prefetch=2,
            grid=grid,
            in_specs=[
                pl.BlockSpec((tile_b, d_max), lambda i, l, *_: (i, 0)),        # x
                pl.BlockSpec((None, d_max, d_max), lambda i, l, *_: (l, 0, 0)),  # W_l
                pl.BlockSpec((None, 1, d_max), lambda i, l, *_: (l, 0, 0)),      # b_l
                pl.BlockSpec((None, 1, d_max), lambda i, l, *_: (l, 0, 0)),      # gamma_l
                pl.BlockSpec((None, 1, d_max), lambda i, l, *_: (l, 0, 0)),      # beta_l
            ],
            out_specs=pl.BlockSpec((tile_b, d_max), lambda i, l, *_: (i, 0)),
            scratch_shapes=[pltpu.VMEM((tile_b, d_max), cdtype)],
        ),
        compiler_params=pltpu.CompilerParams(
            dimension_semantics=("parallel", "arbitrary"),
            vmem_limit_bytes=vmem_limit),
        cost_estimate=cost,
    )(prep["inv_n"], prep["pad_cnt"], xp, W, Bv, G, BT)


# ------------------------------------------------------------------ layered fallback
def _layer_single_k_kernel(x_ref, w_ref, b_ref, g_ref, bt_ref, o_ref, *,
                           inv_n, pad_cnt, apply_ln_relu):
    # Single K step: no accumulator scratch, one pass straight to the output tile.
    y = jnp.dot(x_ref[...], w_ref[...], preferred_element_type=jnp.float32)
    y = y + b_ref[...].astype(jnp.float32)
    if apply_ln_relu:
        y = _ln_relu(y, g_ref[...].astype(jnp.float32),
                     bt_ref[...].astype(jnp.float32), inv_n, pad_cnt)
    o_ref[...] = y.astype(o_ref.dtype)


def _layer_multi_k_kernel(x_ref, w_ref, b_ref, g_ref, bt_ref, o_ref, acc_ref, *,
                          inv_n, pad_cnt, apply_ln_relu):
    k = pl.program_id(1)

    @pl.when(k == 0)
    def _():
        acc_ref[...] = jnp.zeros_like(acc_ref)

    acc_ref[...] += jnp.dot(x_ref[...], w_ref[...], preferred_element_type=jnp.float32)

    @pl.when(k == pl.num_programs(1) - 1)
    def _():
        y = acc_ref[...] + b_ref[...].astype(jnp.float32)
        if apply_ln_relu:
            y = _ln_relu(y, g_ref[...].astype(jnp.float32),
                         bt_ref[...].astype(jnp.float32), inv_n, pad_cnt)
        o_ref[...] = y.astype(o_ref.dtype)


def _fc_layer_padded_call(xp, lyr, tile_k, tile_b, b_pad, out_dtype, budget):
    wp, bp, gp, btp = lyr["w"], lyr["b"], lyr["g"], lyr["bt"]
    k_pad, n_pad = wp.shape
    nb = b_pad // tile_b
    nk = k_pad // tile_k
    inv_n = 1.0 / float(lyr["n_real"])
    pad_cnt = float(n_pad - lyr["n_real"])
    apply_ln_relu = lyr["apply_ln_relu"]
    isz = lambda a: jnp.dtype(a.dtype).itemsize

    need = (2 * tile_b * tile_k * isz(xp) + 2 * tile_k * n_pad * isz(wp)
            + 6 * n_pad * 4 + 2 * tile_b * n_pad * jnp.dtype(out_dtype).itemsize
            + (tile_b * n_pad * 4 if nk > 1 else 0))
    vmem_limit = int(min(budget, max(32 * 1024 * 1024, int(need * 1.25))))

    cost = pl.CostEstimate(
        flops=int(2 * b_pad * k_pad * n_pad),
        transcendentals=int(b_pad if apply_ln_relu else 0),
        bytes_accessed=int(b_pad * k_pad * isz(xp) + k_pad * n_pad * isz(wp)
                           + 3 * n_pad * 4
                           + b_pad * n_pad * jnp.dtype(out_dtype).itemsize))

    if nk == 1:
        kernel = functools.partial(_layer_single_k_kernel, inv_n=inv_n,
                                   pad_cnt=pad_cnt, apply_ln_relu=apply_ln_relu)
        grid = (nb,)
        in_specs = [
            pl.BlockSpec((tile_b, k_pad), lambda i: (i, 0)),
            pl.BlockSpec((k_pad, n_pad), lambda i: (0, 0)),
            pl.BlockSpec((1, n_pad), lambda i: (0, 0)),
            pl.BlockSpec((1, n_pad), lambda i: (0, 0)),
            pl.BlockSpec((1, n_pad), lambda i: (0, 0)),
        ]
        out_specs = pl.BlockSpec((tile_b, n_pad), lambda i: (i, 0))
        scratch = []
        dims = ("parallel",)
    else:
        kernel = functools.partial(_layer_multi_k_kernel, inv_n=inv_n,
                                   pad_cnt=pad_cnt, apply_ln_relu=apply_ln_relu)
        grid = (nb, nk)
        in_specs = [
            pl.BlockSpec((tile_b, tile_k), lambda i, k: (i, k)),
            pl.BlockSpec((tile_k, n_pad), lambda i, k: (k, 0)),
            pl.BlockSpec((1, n_pad), lambda i, k: (0, 0)),
            pl.BlockSpec((1, n_pad), lambda i, k: (0, 0)),
            pl.BlockSpec((1, n_pad), lambda i, k: (0, 0)),
        ]
        out_specs = pl.BlockSpec((tile_b, n_pad), lambda i, k: (i, 0))
        scratch = [pltpu.VMEM((tile_b, n_pad), jnp.float32)]
        dims = ("parallel", "arbitrary")

    return pl.pallas_call(
        kernel,
        out_shape=jax.ShapeDtypeStruct((b_pad, n_pad), out_dtype),
        grid_spec=pltpu.PrefetchScalarGridSpec(
            num_scalar_prefetch=0, grid=grid,
            in_specs=in_specs, out_specs=out_specs, scratch_shapes=scratch),
        compiler_params=pltpu.CompilerParams(
            dimension_semantics=dims, vmem_limit_bytes=vmem_limit),
        cost_estimate=cost,
    )(xp, wp, bp, gp, btp)


# --------------------------------------------------------------- parameter preparation
def prepare_fc_block_params(params, *, outermost_linear=False, compute_dtype=None,
                            force_layered=False):
    """Pad / stack parameters ONCE (outside the forward pass).

    params: list of (w (K, N), b (N,), gamma or None, beta or None), one per layer.
    compute_dtype: optional MXU operand dtype (e.g. jnp.bfloat16); epilogue stays f32.
    """
    cdtype = (jnp.dtype(compute_dtype) if compute_dtype is not None
              else jnp.dtype(params[0][0].dtype))
    c_item = cdtype.itemsize
    n_layers = len(params)
    in_features = int(params[0][0].shape[0])
    out_features = int(params[-1][0].shape[1])
    dims = [in_features] + [int(w.shape[1]) for (w, _, _, _) in params]
    d_max = _round_up(max(dims), 128)

    budget = _vmem_budget_bytes()
    min_tile = 16 if c_item < 4 else 8
    fused_fixed = 2 * d_max * d_max * c_item + 6 * d_max * 4
    fused_per_row = d_max * (3 * c_item + 2 * 4)
    fused_ok = (not force_layered) and \
        (fused_fixed + fused_per_row * min_tile + (4 << 20) <= budget)

    common = {"in_features": in_features, "out_features": out_features,
              "outermost_linear": outermost_linear, "compute_dtype": cdtype}

    if fused_ok:
        Ws = np.zeros((n_layers, d_max, d_max), dtype=cdtype)
        Bs = np.zeros((n_layers, 1, d_max), np.float32)
        Gs = np.zeros((n_layers, 1, d_max), np.float32)
        BTs = np.zeros((n_layers, 1, d_max), np.float32)
        inv_n = np.zeros((n_layers,), np.float32)
        pad_cnt = np.zeros((n_layers,), np.float32)
        for li, (w, b, g, bt) in enumerate(params):
            kf, nf = int(w.shape[0]), int(w.shape[1])
            Ws[li, :kf, :nf] = np.asarray(w.astype(cdtype))
            Bs[li, 0, :nf] = np.asarray(b, np.float32)
            g_np = np.ones((nf,), np.float32) if g is None else np.asarray(g, np.float32)
            bt_np = np.zeros((nf,), np.float32) if bt is None else np.asarray(bt, np.float32)
            Gs[li, 0, :nf] = g_np
            BTs[li, 0, :nf] = bt_np
            inv_n[li] = 1.0 / float(nf)
            pad_cnt[li] = float(d_max - nf)
        return dict(mode="fused", d_max=d_max,
                    W=jnp.asarray(Ws), B=jnp.asarray(Bs),
                    G=jnp.asarray(Gs), BT=jnp.asarray(BTs),
                    inv_n=jnp.asarray(inv_n), pad_cnt=jnp.asarray(pad_cnt),
                    **common)

    # layered fallback: per-layer padded slabs, activation K dim chained to previous n_pad
    layers = []
    k_prev_pad = _round_up(in_features, 128)
    for li, (w, b, g, bt) in enumerate(params):
        kf, nf = int(w.shape[0]), int(w.shape[1])
        n_pad = _round_up(nf, 128)
        Wp = np.zeros((k_prev_pad, n_pad), dtype=cdtype)
        Wp[:kf, :nf] = np.asarray(w.astype(cdtype))
        bp = np.zeros((1, n_pad), np.float32)
        bp[0, :nf] = np.asarray(b, np.float32)
        gp = np.zeros((1, n_pad), np.float32)
        btp = np.zeros((1, n_pad), np.float32)
        gp[0, :nf] = (np.ones((nf,), np.float32) if g is None
                      else np.asarray(g, np.float32))
        btp[0, :nf] = (np.zeros((nf,), np.float32) if bt is None
                       else np.asarray(bt, np.float32))
        last = li == n_layers - 1
        layers.append(dict(w=jnp.asarray(Wp), b=jnp.asarray(bp),
                           g=jnp.asarray(gp), bt=jnp.asarray(btp),
                           n_real=nf, apply_ln_relu=not (last and outermost_linear)))
        k_prev_pad = n_pad
    return dict(mode="layered", layers=layers, **common)


# ------------------------------------------------------------------------- forward pass
def fc_block(x, prep, *, tile_b=512, max_tile_k=None):
    """FCBlock forward. `prep` comes from prepare_fc_block_params."""
    B, K = x.shape
    assert K == prep["in_features"], "feature dim mismatch"
    cdtype = prep["compute_dtype"]
    out_dtype = x.dtype
    budget = _vmem_budget_bytes()
    c_item = jnp.dtype(cdtype).itemsize
    o_item = jnp.dtype(out_dtype).itemsize
    min_tile = 16 if c_item < 4 else 8

    if prep["mode"] == "fused":
        d_max = prep["d_max"]
        fixed = 2 * d_max * d_max * c_item + 6 * d_max * 4 + (1 << 20)
        per_row = d_max * (3 * c_item + 2 * o_item)
        tb = _pick_tile_b(B, per_row, fixed, budget, tile_b, min_tile)
        tb, b_pad = _split_for_megacore(B, tb, min_tile)
        xp = jnp.zeros((b_pad, d_max), cdtype).at[:B, :K].set(x.astype(cdtype))
        out = _fc_block_fused_call(xp, prep, tb, b_pad, out_dtype, budget)
        return out[:B, :prep["out_features"]]

    # layered path: carry the padded activation slab layer to layer, slice once at end.
    layers = prep["layers"]
    tks, worst_per_row, worst_fixed = [], 1, 0
    for lyr in layers:
        k_pad, n_pad = lyr["w"].shape
        tk = _pick_tile_k(k_pad, n_pad, c_item, budget, max_tile_k)
        tks.append(tk)
        multi = (k_pad // tk) > 1
        worst_fixed = max(worst_fixed, 2 * tk * n_pad * c_item + 6 * n_pad * 4 + (1 << 20))
        worst_per_row = max(worst_per_row,
                            2 * tk * c_item + 2 * n_pad * max(c_item, o_item)
                            + (n_pad * 4 if multi else 0))
    tb = _pick_tile_b(B, worst_per_row, worst_fixed, budget, tile_b, min_tile)
    tb, b_pad = _split_for_megacore(B, tb, min_tile)

    k0 = layers[0]["w"].shape[0]
    h = jnp.zeros((b_pad, k0), cdtype).at[:B, :K].set(x.astype(cdtype))
    for li, (lyr, tk) in enumerate(zip(layers, tks)):
        last = li == len(layers) - 1
        odt = out_dtype if last else cdtype
        h = _fc_layer_padded_call(h, lyr, tk, tb, b_pad, odt, budget)
    return h[:B, :prep["out_features"]]


# --------------------------------------------------------------------- init & reference
def init_fc_block_params(key, hidden_ch, num_hidden_layers, in_features,
                         out_features, outermost_linear=False):
    """Matches FCBlock's structure; kaiming_normal_ (fan_in, relu) on weights."""
    dims = [(in_features, hidden_ch)]
    dims += [(hidden_ch, hidden_ch)] * num_hidden_layers
    dims += [(hidden_ch, out_features)]
    params = []
    for li, (fin, fout) in enumerate(dims):
        key, kw, kb = jax.random.split(key, 3)
        w = jax.random.normal(kw, (fin, fout), jnp.float32) * math.sqrt(2.0 / fin)
        bound = 1.0 / math.sqrt(fin)  # default nn.Linear bias init
        b = jax.random.uniform(kb, (fout,), jnp.float32, minval=-bound, maxval=bound)
        last = li == len(dims) - 1
        if last and outermost_linear:
            g, bt = None, None
        else:
            g = jnp.ones((fout,), jnp.float32)
            bt = jnp.zeros((fout,), jnp.float32)
        params.append((w, b, g, bt))
    return params


def fc_block_ref(x, params, *, outermost_linear=False):
    """Pure-JAX reference matching PyTorch FCBlock semantics."""
    h = x
    n_layers = len(params)
    for idx, (w, b, g, bt) in enumerate(params):
        y = h @ w + b
        last = idx == n_layers - 1
        if last and outermost_linear:
            h = y
        else:
            mean = jnp.mean(y, axis=-1, keepdims=True)
            var = jnp.mean((y - mean) ** 2, axis=-1, keepdims=True)
            y = (y - mean) / jnp.sqrt(var + LN_EPS)
            y = y * g + bt
            h = jnp.maximum(y, 0.0)
    return h


# --------------------------------------------------------------------------------- main
if __name__ == "__main__":
    in_features, hidden_ch, out_features = 32, 64, 64
    num_hidden_layers, batch = 2, 16
    outermost_linear = False

    key = jax.random.PRNGKey(0)
    key, kx = jax.random.split(key)
    x = jax.random.normal(kx, (batch, in_features), dtype=jnp.float32)
    params = init_fc_block_params(key, hidden_ch, num_hidden_layers, in_features,
                                  out_features, outermost_linear=outermost_linear)
    ref = fc_block_ref(x, params, outermost_linear=outermost_linear)

    # 1) fused whole-block kernel, f32
    prep = prepare_fc_block_params(params, outermost_linear=outermost_linear)
    out = jax.block_until_ready(fc_block(x, prep))
    assert out.shape == (batch, out_features)
    assert jnp.allclose(out, ref, atol=1e-3, rtol=1e-3), "fused f32 mismatch"

    # 2) fused kernel with a plain final Linear (outermost_linear=True)
    params2 = init_fc_block_params(jax.random.PRNGKey(1), hidden_ch, num_hidden_layers,
                                   in_features, out_features, outermost_linear=True)
    prep2 = prepare_fc_block_params(params2, outermost_linear=True)
    out2 = jax.block_until_ready(fc_block(x, prep2))
    ref2 = fc_block_ref(x, params2, outermost_linear=True)
    assert jnp.allclose(out2, ref2, atol=1e-3, rtol=1e-3), "outermost_linear mismatch"

    # 3) bf16 MXU operands (f32 accumulate / epilogue) — loose tolerance
    prep_bf16 = prepare_fc_block_params(params, outermost_linear=outermost_linear,
                                        compute_dtype=jnp.bfloat16)
    out_bf16 = jax.block_until_ready(fc_block(x, prep_bf16))
    assert float(jnp.max(jnp.abs(out_bf16 - ref))) < 0.25, "bf16 path mismatch"

    # 4) layered fallback path (single-K specialized kernel)
    prep_layered = prepare_fc_block_params(params, outermost_linear=outermost_linear,
                                           force_layered=True)
    out_l = jax.block_until_ready(fc_block(x, prep_layered))
    assert jnp.allclose(out_l, ref, atol=1e-3, rtol=1e-3), "layered mismatch"

    # 5) layered fallback with K tiling (multi-K accumulator kernel), uneven out dim
    params3 = init_fc_block_params(jax.random.PRNGKey(2), 256, 1, 32, 48,
                                   outermost_linear=True)
    prep3 = prepare_fc_block_params(params3, outermost_linear=True, force_layered=True)
    x3 = jax.random.normal(jax.random.PRNGKey(3), (24, 32), dtype=jnp.float32)
    out3 = jax.block_until_ready(fc_block(x3, prep3, max_tile_k=128))
    ref3 = fc_block_ref(x3, params3, outermost_linear=True)
    assert out3.shape == (24, 48)
    assert jnp.allclose(out3, ref3, atol=1e-3, rtol=1e-3), "multi-K layered mismatch"

    print("KERNEL_OK")
</pallas_src>

<mosaic_0001>
module attributes {stable_mosaic.version = 11 : i64} {
  func.func @_fused_block_kernel(%arg0: i32, %arg1: i32, %arg2: memref<4xf32, #tpu.memory_space<smem>>, %arg3: memref<4xf32, #tpu.memory_space<smem>>, %arg4: memref<8x128xf32, #tpu.memory_space<vmem>>, %arg5: memref<1x128x128xf32, #tpu.memory_space<vmem>>, %arg6: memref<1x1x128xf32, #tpu.memory_space<vmem>>, %arg7: memref<1x1x128xf32, #tpu.memory_space<vmem>>, %arg8: memref<1x1x128xf32, #tpu.memory_space<vmem>>, %arg9: memref<8x128xf32, #tpu.memory_space<vmem>>, %arg10: memref<8x128xf32, #tpu.memory_space<vmem>>) attributes {dimension_semantics = [#tpu.dimension_semantics<parallel>, #tpu.dimension_semantics<arbitrary>], iteration_bounds = array<i64: 2, 4>, scalar_prefetch = 2 : i64, scratch_operands = 1 : i64, tpu.core_type = #tpu.core_type<tc>, window_params = [{transform_indices = @transform_0, window_bounds = array<i64: 8, 128>}, {transform_indices = @transform_1, window_bounds = array<i64: 1, 128, 128>}, {transform_indices = @transform_2, window_bounds = array<i64: 1, 1, 128>}, {transform_indices = @transform_3, window_bounds = array<i64: 1, 1, 128>}, {transform_indices = @transform_4, window_bounds = array<i64: 1, 1, 128>}, {transform_indices = @transform_5, window_bounds = array<i64: 8, 128>}]} {
    %c3_i32 = arith.constant 3 : i32
    %0 = arith.cmpi eq, %arg1, %c3_i32 : i32
    %c0_i32 = arith.constant 0 : i32
    %1 = arith.cmpi eq, %arg1, %c0_i32 : i32
    %2 = arith.extui %1 : i1 to i32
    %c0_i32_0 = arith.constant 0 : i32
    %3 = arith.cmpi ne, %2, %c0_i32_0 : i32
    scf.if %3 {
      %c0_21 = arith.constant 0 : index
      %c0_22 = arith.constant 0 : index
      %53 = vector.load %arg4[%c0_21, %c0_22] : memref<8x128xf32, #tpu.memory_space<vmem>>, vector<8x128xf32>
      %c0_23 = arith.constant 0 : index
      %c0_24 = arith.constant 0 : index
      %54 = vector.load %arg10[%c0_23, %c0_24] : memref<8x128xf32, #tpu.memory_space<vmem>>, vector<8x128xf32>
      tpu.vector_store %arg10[%c0_23, %c0_24], %53 {strides = array<i32>} : memref<8x128xf32, #tpu.memory_space<vmem>>, vector<8x128xf32>,
    } else {
    }
    %c0 = arith.constant 0 : index
    %c0_1 = arith.constant 0 : index
    %4 = vector.load %arg10[%c0, %c0_1] : memref<8x128xf32, #tpu.memory_space<vmem>>, vector<8x128xf32>
    %c0_2 = arith.constant 0 : index
    %c0_3 = arith.constant 0 : index
    %c0_4 = arith.constant 0 : index
    %5 = vector.load %arg5[%c0_2, %c0_3, %c0_4] : memref<1x128x128xf32, #tpu.memory_space<vmem>>, vector<1x128x128xf32>
    %6 = vector.shape_cast %5 : vector<1x128x128xf32> to vector<128x128xf32>
    %cst = arith.constant dense<0.000000e+00> : vector<8x128xf32>
    %7 = tpu.matmul %4, %6, %cst {dimension_numbers = #tpu.dot_dimension_numbers<[1], [0], [0], [1], [0, 0, 1, 1], [], []>} : vector<8x128xf32>, vector<128x128xf32>, vector<8x128xf32> -> vector<8x128xf32>
    %c0_5 = arith.constant 0 : index
    %c0_6 = arith.constant 0 : index
    %c0_7 = arith.constant 0 : index
    %8 = vector.load %arg6[%c0_5, %c0_6, %c0_7] : memref<1x1x128xf32, #tpu.memory_space<vmem>>, vector<1x1x128xf32>
    %9 = vector.shape_cast %8 : vector<1x1x128xf32> to vector<1x128xf32>
    %10 = vector.broadcast %9 : vector<1x128xf32> to vector<8x128xf32>
    %11 = arith.addf %7, %10 : vector<8x128xf32>
    %12 = arith.index_cast %arg1 : i32 to index
    %13 = memref.load %arg2[%12] : memref<4xf32, #tpu.memory_space<smem>>
    %14 = arith.index_cast %arg1 : i32 to index
    %15 = memref.load %arg3[%14] : memref<4xf32, #tpu.memory_space<smem>>
    %c0_8 = arith.constant 0 : index
    %c0_9 = arith.constant 0 : index
    %c0_10 = arith.constant 0 : index
    %16 = vector.load %arg7[%c0_8, %c0_9, %c0_10] : memref<1x1x128xf32, #tpu.memory_space<vmem>>, vector<1x1x128xf32>
    %17 = vector.shape_cast %16 : vector<1x1x128xf32> to vector<1x128xf32>
    %c0_11 = arith.constant 0 : index
    %c0_12 = arith.constant 0 : index
    %c0_13 = arith.constant 0 : index
    %18 = vector.load %arg8[%c0_11, %c0_12, %c0_13] : memref<1x1x128xf32, #tpu.memory_space<vmem>>, vector<1x1x128xf32>
    %19 = vector.shape_cast %18 : vector<1x1x128xf32> to vector<1x128xf32>
    %cst_14 = arith.constant dense<0.000000e+00> : vector<8xf32>
    %20 = vector.multi_reduction <add>, %11, %cst_14 [1] : vector<8x128xf32> to vector<8xf32>
    %21 = vector.shape_cast %20 : vector<8xf32> to vector<8x1xf32>
    %22 = vector.broadcast %13 : f32 to vector<8x1xf32>
    %23 = arith.mulf %21, %22 : vector<8x1xf32>
    %24 = vector.broadcast %23 : vector<8x1xf32> to vector<8x128xf32>
    %25 = arith.subf %11, %24 : vector<8x128xf32>
    %26 = arith.mulf %25, %25 : vector<8x128xf32>
    %cst_15 = arith.constant dense<0.000000e+00> : vector<8xf32>
    %27 = vector.multi_reduction <add>, %26, %cst_15 [1] : vector<8x128xf32> to vector<8xf32>
    %28 = vector.shape_cast %27 : vector<8xf32> to vector<8x1xf32>
    %29 = arith.mulf %23, %23 : vector<8x1xf32>
    %30 = vector.broadcast %15 : f32 to vector<8x1xf32>
    %31 = arith.mulf %30, %29 : vector<8x1xf32>
    %32 = arith.subf %28, %31 : vector<8x1xf32>
    %33 = vector.broadcast %13 : f32 to vector<8x1xf32>
    %34 = arith.mulf %32, %33 : vector<8x1xf32>
    %cst_16 = arith.constant 0.000000e+00 : f32
    %35 = vector.broadcast %cst_16 : f32 to vector<8x1xf32>
    %36 = arith.maximumf %34, %35 : vector<8x1xf32>
    %cst_17 = arith.constant 9.99999974E-6 : f32
    %37 = vector.broadcast %cst_17 : f32 to vector<8x1xf32>
    %38 = arith.addf %36, %37 : vector<8x1xf32>
    %39 = math.rsqrt %38 : vector<8x1xf32>
    %40 = vector.broadcast %39 : vector<8x1xf32> to vector<8x128xf32>
    %41 = arith.mulf %25, %40 : vector<8x128xf32>
    %42 = vector.broadcast %17 : vector<1x128xf32> to vector<8x128xf32>
    %43 = arith.mulf %41, %42 : vector<8x128xf32>
    %44 = vector.broadcast %19 : vector<1x128xf32> to vector<8x128xf32>
    %45 = arith.addf %43, %44 : vector<8x128xf32>
    %cst_18 = arith.constant 0.000000e+00 : f32
    %46 = vector.broadcast %cst_18 : f32 to vector<8x128xf32>
    %47 = arith.maximumf %45, %46 : vector<8x128xf32>
    %true = arith.constant true
    %48 = arith.xori %0, %true : i1
    %49 = arith.extui %48 : i1 to i32
    %c0_i32_19 = arith.constant 0 : i32
    %50 = arith.cmpi ne, %49, %c0_i32_19 : i32
    scf.if %50 {
      %c0_21 = arith.constant 0 : index
      %c0_22 = arith.constant 0 : index
      %53 = vector.load %arg10[%c0_21, %c0_22] : memref<8x128xf32, #tpu.memory_space<vmem>>, vector<8x128xf32>
      tpu.vector_store %arg10[%c0_21, %c0_22], %47 {strides = array<i32>} : memref<8x128xf32, #tpu.memory_space<vmem>>, vector<8x128xf32>,
    } else {
    }
    %51 = arith.extui %0 : i1 to i32
    %c0_i32_20 = arith.constant 0 : i32
    %52 = arith.cmpi ne, %51, %c0_i32_20 : i32
    scf.if %52 {
      %c0_21 = arith.constant 0 : index
      %c0_22 = arith.constant 0 : index
      %53 = vector.load %arg9[%c0_21, %c0_22] : memref<8x128xf32, #tpu.memory_space<vmem>>, vector<8x128xf32>
      tpu.vector_store %arg9[%c0_21, %c0_22], %47 {strides = array<i32>} : memref<8x128xf32, #tpu.memory_space<vmem>>, vector<8x128xf32>,
    } else {
    }
    return
  }
  func.func @transform_0(%arg0: i32, %arg1: i32, %arg2: memref<4xf32, #tpu.memory_space<smem>>, %arg3: memref<4xf32, #tpu.memory_space<smem>>) -> (i32, i32) {
    %c0_i32 = arith.constant 0 : i32
    %c0_i32_0 = arith.constant 0 : i32
    return %arg0, %c0_i32 : i32, i32
  }
  func.func @transform_1(%arg0: i32, %arg1: i32, %arg2: memref<4xf32, #tpu.memory_space<smem>>, %arg3: memref<4xf32, #tpu.memory_space<smem>>) -> (i32, i32, i32) {
    %c0_i32 = arith.constant 0 : i32
    %c0_i32_0 = arith.constant 0 : i32
    %c0_i32_1 = arith.constant 0 : i32
    return %arg1, %c0_i32, %c0_i32_0 : i32, i32, i32
  }
  func.func @transform_2(%arg0: i32, %arg1: i32, %arg2: memref<4xf32, #tpu.memory_space<smem>>, %arg3: memref<4xf32, #tpu.memory_space<smem>>) -> (i32, i32, i32) {
    %c0_i32 = arith.constant 0 : i32
    %c0_i32_0 = arith.constant 0 : i32
    %c0_i32_1 = arith.constant 0 : i32
    return %arg1, %c0_i32, %c0_i32_0 : i32, i32, i32
  }
  func.func @transform_3(%arg0: i32, %arg1: i32, %arg2: memref<4xf32, #tpu.memory_space<smem>>, %arg3: memref<4xf32, #tpu.memory_space<smem>>) -> (i32, i32, i32) {
    %c0_i32 = arith.constant 0 : i32
    %c0_i32_0 = arith.constant 0 : i32
    %c0_i32_1 = arith.constant 0 : i32
    return %arg1, %c0_i32, %c0_i32_0 : i32, i32, i32
  }
  func.func @transform_4(%arg0: i32, %arg1: i32, %arg2: memref<4xf32, #tpu.memory_space<smem>>, %arg3: memref<4xf32, #tpu.memory_space<smem>>) -> (i32, i32, i32) {
    %c0_i32 = arith.constant 0 : i32
    %c0_i32_0 = arith.constant 0 : i32
    %c0_i32_1 = arith.constant 0 : i32
    return %arg1, %c0_i32, %c0_i32_0 : i32, i32, i32
  }
  func.func @transform_5(%arg0: i32, %arg1: i32, %arg2: memref<4xf32, #tpu.memory_space<smem>>, %arg3: memref<4xf32, #tpu.memory_space<smem>>) -> (i32, i32) {
    %c0_i32 = arith.constant 0 : i32
    %c0_i32_0 = arith.constant 0 : i32
    return %arg0, %c0_i32 : i32, i32
  }
}

</mosaic_0001>

<bundles_post_ra>
// kernel: tpu_custom_call.1
= control target key start
LH: loop header
LB: loop body
LE: loop exit
PB: predicated region body
PF: predicated region fallthrough
CT: control target
= control target key end

     0   :  { %s1465_s0 = inlined_call_operand.hbm [shape: f32[4], index: 0, kind: input, shape index: {}]   ;;  %s1466_s2 = inlined_call_operand.hbm [shape: f32[16,128], index: 2, kind: input, shape index: {}]   ;;  %s1467_s3 = inlined_call_operand.hbm [shape: f32[4,128,128], index: 3, kind: input, shape index: {}]   ;;  %s1468_s4 = inlined_call_operand.vmem [shape: f32[4,1,128], index: 4, kind: input, shape index: {}]   ;;  %s1469_s5 = inlined_call_operand.vmem [shape: f32[4,1,128], index: 5, kind: input, shape index: {}]   ;;  %s1470_s6 = inlined_call_operand.vmem [shape: f32[4,1,128], index: 6, kind: input, shape index: {}]   ;;  %s1471_s7 = inlined_call_operand.hbm [shape: f32[16,128], index: 7, kind: output, shape index: {}]   ;;  %s1472_s1 = inlined_call_operand.vmem [shape: f32[4], index: 1, kind: input, shape index: {}]  }
   0x1   :  { %1483 = sst [smem:[#allocation22_spill]] %s1466_s2  ;;  %s851_s26 = scalar_lea.hbm %s1465_s0, 16 }
   0x2   :  { %p852_p0 = scmp.ne.s32.totalorder %s1465_s0, %s851_s26  ;;  %p855_p1 = scmp.lt.u32.totalorder %s851_s26, %s1465_s0 }
   0x4   :  { %p857_p2 = pnand %p855_p1, %p852_p0 }
   0x6   :  { %860 = shalt.err (!%p857_p2)  }
   0x7   :  { %s1063_s8 = smov [#allocation4]   ;;  %s14_s13 = sshll.u32 %s1472_s1, 4  ;;  %s15_s13 = int_to_ptr.vmem [resolvable:$true] %s14_s13 }
   0x8   :  { %13 = dma.hbm_to_smem %s1465_s0, 16, %s1063_s8, [#allocation3] }
   0x9   :  { %s861_s14 = scalar_lea.vmem %s15_s13, 16  ;;  %p866_p4 = scmp.lt.s32.totalorder %s15_s13, %s15_s13 }
   0xa   :  { %p862_p3 = scmp.ne.s32.totalorder %s15_s13, %s861_s14  ;;  %p867_p5 = scmp.lt.s32.totalorder %s861_s14, %s861_s14 }
   0xc   :  { %p868_p6 = por %p867_p5, %p866_p4 }
   0xe   :  { %p869_p7 = pnand %p868_p6, %p862_p3 }
  0x10   :  { %872 = shalt.err (!%p869_p7)  }
  0x11   :  { %s1064_s15 = smov [#allocation5]  }
  0x12   :  { %17 = dma.vmem_to_smem %s15_s13, 16, %s1064_s15, [#allocation3] }
  0x13   :  { %1005 = dma.done.wait [#allocation3], 32 }
  0x14   :  { %1006 = vsyncadd [#allocation3], 4294967264 }
  0x15   :  { %19 = sfence }
  0x16   :  { %20 = vsyncpa [#allocation7], 0 }
  0x17   :  { %22 = vsyncpa [#allocation7 + $0x1], 0 }
  0x18   :  { %23 = vsyncpa [#allocation10], 0 }
  0x19   :  { %25 = vsyncpa [#allocation10 + $0x1], 0 }
  0x1a   :  { %26 = vsyncpa [#allocation8], 0 }
  0x1b   :  { %28 = vsyncpa [#allocation8 + $0x1], 0  ;;  %s1128_s0 = smov 0   ;;  %s1130_s1 = smov 0  }
  0x1c   :  { %s1132_s16 = smov 0   ;;  %s1134_s17 = smov 0  }
  0x1d   :  { %s1136_s18 = smov 0   ;;  %s1138_s19 = smov 0  }
  0x1e   :  { %s1140_s20 = smov 0   ;;  %s1142_s21 = smov 0  }
  0x1f   :  { %s1144_s22 = smov 0   ;;  %s1146_s23 = smov 0  }
  0x20   :  { %s1148_s24 = smov 0  }
  0x21 LB: > { %1484 = sst [smem:[#allocation16_spill]] %s1033_s17  ;;  %s635_s25 = sadd.s32 4294967295, %s1061_s24   ;;  %s1061_s24 = sphi %s1148_s24, %s1522_s24   ;;  %s1057_s23 = sphi %s1146_s23, %s1521_s23   ;;  %s1053_s22 = sphi %s1144_s22, %s1520_s22   ;;  %s1049_s21 = sphi %s1142_s21, %s1519_s21   ;;  %s1045_s20 = sphi %s1140_s20, %s1510_s20   ;;  %s1041_s19 = sphi %s1138_s19, %s1518_s19   ;;  %s1037_s18 = sphi %s1136_s18, %s1517_s18   ;;  %s1033_s17 = sphi %s1134_s17, %s1516_s17   ;;  %s1029_s16 = sphi %s1132_s16, %s1515_s16   ;;  %s1025_s1 = sphi %s1130_s1, %s1514_s1   ;;  %s1021_s0 = sphi %s1128_s0, %s1513_s0  }
  0x22   : > { %1485 = sst [smem:[#allocation17_spill]] %s1053_s22  ;;  %s636_s26 = sadd.s32 4294967294, %s1061_s24  }
  0x23   : > { %1486 = sst [smem:[#allocation18_spill]] %s1061_s24  ;;  %p60_p8 = scmp.ne.s32.totalorder %s1041_s19, %s1037_s18 }
  0x24   : > { %p61_p9 = scmp.eq.s32.totalorder %s1061_s24, 0  ;;  %p66_p10 = scmp.ne.s32.totalorder %s1037_s18, %s1033_s17 }
  0x25   : > { %p67_p11 = scmp.eq.s32.totalorder %s635_s25, 0  ;;  %p86_p13 = scmp.ne.s32.totalorder %s1029_s16, %s1025_s1 }
  0x26   : > { %p1190_p12 = por %p61_p9, %p60_p8  ;;  %p92_p1 = scmp.ne.s32.totalorder %s1025_s1, %s1021_s0 }
  0x27   : > { %p1196_p0 = por %p67_p11, %p66_p10  ;;  %p1201_p2 = por %p86_p13, %p61_p9 }
  0x28   : > { %p194_p3 = scmp.eq.s32.totalorder %s635_s25, 7  ;;  %p1205_p4 = por %p92_p1, %p67_p11 }
  0x29   : > { %s1488_s30 = scalar_select %p1196_p0, 1, 0 }
  0x2a   : > { %s1490_s9 = scalar_select %p1205_p4, 1, 0 }
  0x2b   : > { %p200_p5 = scmp.eq.s32.totalorder %s636_s26, 7  ;;  %p1209_p6 = por %p194_p3, %p60_p8 }
  0x2c   : > { %p752_p9 = scmp.lt.s32.totalorder %s1061_s24, 8  ;;  %s220_s12 = sand.u32 1, %s1041_s19  }
  0x2d   : > { %s1491_s10 = scalar_select %p1209_p6, 1, 0 }
  0x2e   : > { %p1213_p7 = por %p200_p5, %p66_p10  ;;  %s640_s13 = sshll.u32 %s1057_s23, 7 }
  0x2f   : > { %s639_s14 = sshll.u32 %s220_s12, 3  ;;  %s1494_s2 = sld [smem:[#allocation22_spill]] }
  0x30   : > { %s1492_s11 = scalar_select %p1213_p7, 1, 0 }
  0x31   : > { %s224_s26 = scalar_lea.vmem [#allocation6], %s639_s14  ;;  %p1227_p8 = pnand %p752_p9, %p1190_p12 }
  0x32   : > { %1493 = sst [smem:[#allocation19_spill]] %s1492_s11  ;;  %s231_s28 = sshll.u32 %s224_s26, 4  ;;  %s1231_s28 = int_to_ptr.vmem [resolvable:$true] %s231_s28 }
  0x33   : > { %p1235_p10 = pnand %p752_p9, %p1201_p2  ;;  %p875_p1 = pneg %p1227_p8 }
  0x35   : > { %s1223_s25 = scalar_lea.hbm %s1494_s2, %s640_s13  ;;  %s221_s13 = scalar_lea.sflag [#allocation7], %s220_s12 }
  0x36   : > { %s873_s0 = scalar_lea.hbm %s1223_s25, 128  ;;  %s878_s26 = scalar_lea.hbm %s1494_s2, 256 }
  0x37   : > { %p874_p13 = scmp.ne.s32.totalorder %s1223_s25, %s873_s0  ;;  %p879_p2 = scmp.lt.u32.totalorder %s1223_s25, %s1494_s2 }
  0x38   : > { %p880_p5 = scmp.lt.u32.totalorder %s878_s26, %s873_s0  ;;  %p882_p11 = scmp.lt.u32.totalorder %s873_s0, %s1223_s25 }
  0x39   : > { %p876_p12 = pnand %p875_p1, %p874_p13 }
  0x3a   : > { %p881_p9 = por %p880_p5, %p879_p2 }
  0x3b   : > { %p877_p3 = pneg %p876_p12 }
  0x3c   : > { %p883_p7 = por %p882_p11, %p881_p9 }
  0x3e   : > { %p884_p6 = pnand %p883_p7, %p877_p3 }
  0x40   : > { %887 = shalt.err (!%p884_p6)
}
  0x41   : > { %s888_s12 = scalar_lea.vmem %s1231_s28, 128  ;;  %s1065_s29 = smov [#allocation6]  }
  0x42   : > { %p889_p13 = scmp.ne.s32.totalorder %s1231_s28, %s888_s12  ;;  %s893_s14 = sshll.u32 %s1065_s29, 4  ;;  %s894_s14 = int_to_ptr.vmem [resolvable:$false] %s893_s14 }
  0x43   : > { %s895_s11 = scalar_lea.vmem %s894_s14, 256  ;;  %p896_p0 = scmp.lt.s32.totalorder %s1231_s28, %s894_s14 }
  0x44   : > { %p891_p12 = pnand %p889_p13, %p875_p1  ;;  %p897_p2 = scmp.lt.s32.totalorder %s895_s11, %s888_s12 }
  0x46   : > { %p892_p4 = pneg %p891_p12  ;;  %p898_p5 = por %p897_p2, %p896_p0 }
  0x48   : > { %p899_p11 = pnand %p898_p5, %p892_p4 }
  0x4a   : > { %902 = shalt.err (!%p899_p11)
}
  0x4b   : > { %744 = dma.hbm_to_vmem [thread:$0]  (!%p1227_p8), %s1223_s25, 128, %s1231_s28, %s221_s13  }
  0x4c   : > { %p275_p6 = scmp.lt.s32.totalorder %s1061_s24, 9  ;;  %s79_s0 = sadd.s32 1, %s1029_s16 }
  0x4d   : > { %p1497_p7 = scmp.ge.s32.totalorder %s1061_s24, 1  ;;  %s43_s27 = sadd.s32 1, %s1053_s22 }
  0x4e   : > { %s238_s8 = sand.u32 1, %s1029_s16   ;;  %p44_p4 = scmp.ge.s32.totalorder %s43_s27, 4 }
  0x4f   : > { %p1269_p0 = pnand %p1497_p7, %p275_p6  ;;  %s641_s12 = sshll.u32 %s238_s8, 7 }
  0x50   : > { %s658_s29 = sshll.u32 %s1053_s22, 11  ;;  %s1524_s27 = smov (%p44_p4, %s43_s27), 0 }
  0x51   : > { %1499 = sst [smem:[#allocation20_spill]] %s1524_s27  ;;  %s1500_s14 = sadd.s32 1, %s1057_s23 }
  0x52   : > { %s1526_s14 = smov (!%p44_p4, %s1500_s14), %s1057_s23  ;;  %s76_s28 = ssub.s32 %s1053_s22, %s1524_s27 }
  0x53   : > { %p48_p8 = scmp.ge.s32.totalorder %s1526_s14, 2  ;;  %p77_p1 = scmp.eq.s32.totalorder %s76_s28, 0 }
  0x54   : > { %s1286_s11 = scalar_lea.hbm %s1467_s3, %s658_s29  ;;  %s242_s2 = scalar_lea.vmem [#allocation9], %s641_s12 }
  0x55   : > { %s249_s17 = sshll.u32 %s242_s2, 4  ;;  %s1528_s14 = smov (%p48_p8, %s1526_s14), 0  ;;  %s1295_s17 = int_to_ptr.vmem [resolvable:$true] %s249_s17 }
  0x56   : > { %1501 = sst [smem:[#allocation21_spill]] %s1528_s14  ;;  %s50_s27 = ssub.s32 %s1057_s23, %s1528_s14 }
  0x57   : > { %s1291_s24 = scalar_select %p77_p1, %s1029_s16, %s79_s0  }
  0x58   : > { %p51_p3 = scmp.eq.s32.totalorder %s50_s27, 0  ;;  %s1502_s28 = sadd.s32 1, %s1041_s19 }
  0x59   : > { %s1302_s29 = scalar_lea.sflag [#allocation10], %s238_s8  ;;  %s903_s25 = scalar_lea.hbm %s1286_s11, 2048 }
  0x5a   : > { %s1300_s22 = scalar_select %p51_p3, %s1041_s19, %s1502_s28  }
  0x5b   : > { %p904_p9 = scmp.ne.s32.totalorder %s1286_s11, %s903_s25  ;;  %p905_p13 = pneg %p1235_p10 }
  0x5c   : > { %s908_s12 = scalar_lea.hbm %s1467_s3, 8192  ;;  %p909_p5 = scmp.lt.u32.totalorder %s1286_s11, %s1467_s3 }
  0x5d   : > { %p906_p12 = pnand %p905_p13, %p904_p9  ;;  %p910_p11 = scmp.lt.u32.totalorder %s908_s12, %s903_s25 }
  0x5e   : > { %p912_p7 = scmp.lt.u32.totalorder %s903_s25, %s1286_s11 }
  0x5f   : > { %p907_p2 = pneg %p906_p12  ;;  %p911_p6 = por %p910_p11, %p909_p5 }
  0x61   : > { %p913_p4 = por %p912_p7, %p911_p6 }
  0x63   : > { %p914_p8 = pnand %p913_p4, %p907_p2 }
  0x65   : > { %917 = shalt.err (!%p914_p8)
}
  0x66   : > { %s918_s27 = scalar_lea.vmem %s1295_s17, 2048  ;;  %s1066_s8 = smov [#allocation9]  }
  0x67   : > { %p919_p1 = scmp.ne.s32.totalorder %s1295_s17, %s918_s27  ;;  %s923_s28 = sshll.u32 %s1066_s8, 4  ;;  %s924_s28 = int_to_ptr.vmem [resolvable:$false] %s923_s28 }
  0x68   : > { %s925_s14 = scalar_lea.vmem %s924_s28, 4096  ;;  %p926_p12 = scmp.lt.s32.totalorder %s1295_s17, %s924_s28 }
  0x69   : > { %p921_p3 = pnand %p919_p1, %p905_p13  ;;  %p927_p5 = scmp.lt.s32.totalorder %s925_s14, %s918_s27 }
  0x6b   : > { %p922_p9 = pneg %p921_p3  ;;  %p928_p11 = por %p927_p5, %p926_p12 }
  0x6d   : > { %p929_p6 = pnand %p928_p11, %p922_p9 }
  0x6f   : > { %932 = shalt.err (!%p929_p6)
}
  0x70   : > { %s1067_s25 = smov 128   ;;  %s1068_s2 = smov 8  }
  0x71   : > { %747 = dma.hbm_to_vmem [thread:$0]  (!%p1235_p10), %s1286_s11, 2048, %s1295_s17, %s1302_s29, %s1067_s25, %s1067_s25, %s1068_s2  }
  0x72   : > { %279 = sbr.rel (%p1269_p0) target bundleno = 736 (0x2e0), region = 40  ;;  %s1333_s0 = sand.u32 (!%p1269_p0), 1, %s1037_s18  }
  0x73   : > { %s645_s12 = sshll.u32 (!%p1269_p0), %s1333_s0, 3  ;;  %s282_s13 = scalar_lea.sflag (!%p1269_p0), [#allocation7], %s1333_s0 }
  0x74   : > { %s285_s27 = scalar_lea.vmem (!%p1269_p0), [#allocation6], %s645_s12  ;;  %p1503_p13 = scmp.ne.s32.totalorder (!%p1269_p0), %s1488_s30, 0 }
  0x79   : > { %1008 = dma.done.wait (%p1503_p13), %s282_s13, 128  }
  0x7a   : > { %1010 = vsyncadd (%p1503_p13), %s282_s13, 4294967168  ;;  %s290_s17 = sand.u32 1, %s1025_s1   ;;  %p1504_p10 = scmp.ne.s32.totalorder %s1490_s9, 0 }
  0x7b   : > { %s646_s15 = sshll.u32 %s290_s17, 7  ;;  %s291_s26 = scalar_lea.sflag [#allocation10], %s290_s17 }
  0x7c   : > { %s1342_s11 = scalar_lea.vmem [#allocation9], %s646_s15 }
  0x7d   : > { %1012 = dma.done.wait (%p1504_p10), %s291_s26, 2048  }
  0x7e   : > { %1014 = vsyncadd (%p1504_p10), %s291_s26, 4294965248  ;;  %p335_p0 = scmp.lt.s32.totalorder %s1045_s20, 3  ;;  %s1364_s15 = scalar_lea.vmem [#allocation11], %s645_s12 }
  0x7f   : > { %p648_p2 = scmp.ne.s32.totalorder %s1045_s20, 0 }
  0x80   : > { %s1350_s29 = scalar_select %p335_p0, %s1045_s20, 3 }
  0x81   : > { %348 = sbr.rel (%p648_p2) target bundleno = 136 (0x88), region = 52  ;;  %v349_v0 = vld [vmem:[%s285_s27] sm:$0xff] (!%p648_p2) }
  0x82   : > { %s337_s28 = scalar_lea.vmem %s1468_s4, %s1350_s29  ;;  %s340_s2 = scalar_lea.vmem %s1469_s5, %s1350_s29  ;;  %350 = vst [vmem:[#allocation2] sm:$0xff] (!%p648_p2), %v349_v0 }
  0x83   : > { %s343_s9 = scalar_lea.vmem %s1470_s6, %s1350_s29 }
  0x88 PF: > { %v352_v1 = vld [vmem:[%s1342_s11] sm:$0xff]  ;;  %v353_v2 = vld [vmem:[%s1342_s11 + $0x8] sm:$0xff]  ;;  %v354_v3 = vld [vmem:[%s1342_s11 + $0x10] sm:$0xff]  ;;  %v1069_v4 = vmov 0.0|0.0   ;;  %vm1070_vm0 = vmmov 0   ;;  %v1071_v7 = vmov 0.0  }
  0x89   : > { %711 = vmatprep.subr.bf16.mxu0 %v1069_v4  ;;  %v712_v5 = vpack.c.bf16 %v353_v2, %v352_v1  ;;  %v355_v6 = vld [vmem:[%s1342_s11 + $0x18] sm:$0xff]  ;;  %708 = vmatprep.mubr.msk.f32.mxu0 %vm1070_vm0, %v1071_v7  ;;  %v356_v9 = vld [vmem:[%s1342_s11 + $0x20] sm:$0xff]  ;;  %v357_v10 = vld [vmem:[%s1342_s11 + $0x28] sm:$0xff]  ;;  %s445_s26 = sld [smem:[#allocation4 + %s1045_s20]]  ;;  %p652_p7 = scmp.eq.s32.totalorder %s1045_s20, 3 }
  0x8a   : > { %v715_v8 = vpack.c.bf16 %v355_v6, %v354_v3  ;;  %v718_v11 = vpack.c.bf16 %v357_v10, %v356_v9  ;;  %v358_v12 = vld [vmem:[%s1342_s11 + $0x30] sm:$0xff]  ;;  %v359_v13 = vld [vmem:[%s1342_s11 + $0x38] sm:$0xff]  ;;  %v360_v15 = vld [vmem:[%s1342_s11 + $0x40] sm:$0xff] }
  0x8b   : > { %713 = vmatpush3.bf16.msra.mxu0 %v712_v5  ;;  %v721_v14 = vpack.c.bf16 %v359_v13, %v358_v12  ;;  %v361_v16 = vld [vmem:[%s1342_s11 + $0x48] sm:$0xff]  ;;  %v362_v18 = vld [vmem:[%s1342_s11 + $0x50] sm:$0xff]  ;;  %v363_v19 = vld [vmem:[%s1342_s11 + $0x58] sm:$0xff] }
  0x8c   : > { %714 = vmatprep.subr.bf16.mxu0 %v1069_v4  ;;  %v724_v17 = vpack.c.bf16 %v361_v16, %v360_v15  ;;  %v727_v20 = vpack.c.bf16 %v363_v19, %v362_v18  ;;  %v364_v21 = vld [vmem:[%s1342_s11 + $0x60] sm:$0xff]  ;;  %v365_v22 = vld [vmem:[%s1342_s11 + $0x68] sm:$0xff]  ;;  %v366_v24 = vld [vmem:[%s1342_s11 + $0x70] sm:$0xff] }
  0x8d   : > { %v730_v23 = vpack.c.bf16 %v365_v22, %v364_v21  ;;  %v367_v25 = vld [vmem:[%s1342_s11 + $0x78] sm:$0xff]  ;;  %v351_v27 = vld [vmem:[#allocation2] sm:$0xff]  ;;  %v649_v28 = vld [vmem:[%s337_s28] ss:$0 sm:$0xff]  ;;  %s446_s11 = sld [smem:[#allocation5 + %s1045_s20]] }
  0x8e   : > { %v733_v26 = vpack.c.bf16 %v367_v25, %v366_v24  ;;  %v650_v46 = vld [vmem:[%s340_s2] ss:$0 sm:$0xff] }
  0x8f   : > { %716 = vmatpush3.bf16.msra.mxu0 %v715_v8  ;;  %v451_v32 = vstv %s445_s26  ;;  %v651_v48 = vld [vmem:[%s343_s9] ss:$0 sm:$0xff] }
  0x90   : > { %717 = vmatprep.subr.bf16.mxu0 %v1069_v4 }
  0x93   : > { %719 = vmatpush3.bf16.msra.mxu0 %v718_v11  ;;  %v458_v38 = vstv %s446_s11 }
  0x94   : > { %720 = vmatprep.subr.bf16.mxu0 %v1069_v4 }
  0x97   : > { %722 = vmatpush3.bf16.msra.mxu0 %v721_v14 }
  0x98   : > { %723 = vmatprep.subr.bf16.mxu0 %v1069_v4 }
  0x9b   : > { %725 = vmatpush3.bf16.msra.mxu0 %v724_v17 }
  0x9c   : > { %726 = vmatprep.subr.bf16.mxu0 %v1069_v4 }
  0x9f   : > { %728 = vmatpush3.bf16.msra.mxu0 %v727_v20 }
  0xa0   : > { %729 = vmatprep.subr.bf16.mxu0 %v1069_v4 }
  0xa3   : > { %731 = vmatpush3.bf16.msra.mxu0 %v730_v23 }
  0xa4   : > { %732 = vmatprep.subr.bf16.mxu0 %v1069_v4 }
  0xa7   : > { %734 = vmatpush3.bf16.msra.mxu0 %v733_v26 }
  0xaa   : > { %709 = vmatmul.mubr.f32.vlgmr.msra.gmra.mrb[0].mxu0 %v351_v27 }
 0x17d   : > { %v441_v29 = vpop.f32.mrb[0].mxu0 }
 0x17e   : > { %v442_v30 = vadd.f32 %v649_v28, %v441_v29  ;;  %v710_v31 = vpop.f32.mrb[1].mxu0 }
 0x180   : > { %449 = vadd.xlane.f32.xlu0 %v442_v30 }
 0x20d   : > { %v450_v33 = vpop.xlane.xlu0 %449 }
 0x20e   : > { %v452_v34 = vmul.f32 %v451_v32, %v450_v33 }
 0x210   : > { %v453_v35 = vsub.f32 %v442_v30, %v452_v34  ;;  %v457_v37 = vmul.f32 %v452_v34, %v452_v34 }
 0x212   : > { %v454_v36 = vmul.f32 %v453_v35, %v453_v35  ;;  %v459_v39 = vmul.f32 %v458_v38, %v457_v37 }
 0x214   : > { %455 = vadd.xlane.f32.xlu0 %v454_v36 }
 0x2a1   : > { %v456_v40 = vpop.xlane.xlu0 %455 }
 0x2a2   : > { %v460_v41 = vsub.f32 %v456_v40, %v459_v39 }
 0x2a4   : > { %v461_v42 = vmul.f32 %v460_v41, %v451_v32 }
 0x2a6   : > { %v462_v43 = vmax.f32 %v461_v42, 0.0 }
 0x2a8   : > { %v463_v44 = vadd.f32 1e-05, %v462_v43 }
 0x2aa   : > { %849 = vrsqrt.f32 %v463_v44 }
 0x2b4   : > { %v850_v45 = vpop.eup %849 }
 0x2b5   : > { %v465_v47 = vmul.f32 %v850_v45, %v453_v35  ;;  %484 = sbr.rel (%p652_p7) target bundleno = 702 (0x2be), region = 56 }
 0x2b7   : > { %v472_v49 = vmul.f32 %v650_v46, %v465_v47 }
 0x2b9   : > { %v479_v50 = vadd.f32 %v651_v48, %v472_v49 }
 0x2bb   : > { %v480_v51 = vmax.f32 %v479_v50, 0.0 }
 0x2bd   : > { %485 = vst [vmem:[#allocation2] sm:$0xff] %v480_v51 }
 0x2be PF: > { %p653_p4 = scmp.ne.s32.totalorder %s1045_s20, 3 }
 0x2bf   : > { %489 = vst [vmem:[%s1364_s15] sm:$0xff] (!%p653_p4), %v480_v51 }
 0x2c0   : > { %488 = sbr.rel (%p653_p4) target bundleno = 711 (0x2c7), region = 60 }
 0x2c7 PF: > { %s655_s29 = sshll.u32 %s1049_s21, 7  ;;  %s504_s17 = sshll.u32 %s1364_s15, 4  ;;  %s505_s17 = int_to_ptr.vmem [resolvable:$true] %s504_s17 }
 0x2c8   : > { %s1407_s13 = scalar_lea.hbm %s1471_s7, %s655_s29  ;;  %s491_s9 = scalar_lea.sflag [#allocation8], %s1333_s0 }
 0x2c9   : > { %s933_s12 = scalar_lea.vmem %s505_s17, 128  ;;  %p1505_p1 = scmp.ne.s32.totalorder %s1491_s10, 0 }
 0x2ca   : > { %p934_p8 = scmp.ne.s32.totalorder %s505_s17, %s933_s12  ;;  %s1072_s20 = smov [#allocation11]  }
 0x2cb   : > { %s937_s27 = sshll.u32 %s1072_s20, 4  ;;  %s938_s27 = int_to_ptr.vmem [resolvable:$false] %s937_s27 }
 0x2cc   : > { %p935_p3 = pnand %p934_p8, %p1505_p1  ;;  %s939_s26 = scalar_lea.vmem %s938_s27, 256 }
 0x2cd   : > { %p940_p12 = scmp.lt.s32.totalorder %s505_s17, %s938_s27  ;;  %p941_p5 = scmp.lt.s32.totalorder %s939_s26, %s933_s12 }
 0x2ce   : > { %p936_p9 = pneg %p935_p3 }
 0x2cf   : > { %p942_p11 = por %p941_p5, %p940_p12 }
 0x2d1   : > { %p943_p6 = pnand %p942_p11, %p936_p9 }
 0x2d3   : > { %946 = shalt.err (!%p943_p6)
}
 0x2d4   : > { %s947_s21 = scalar_lea.hbm %s1407_s13, 128  ;;  %s951_s11 = scalar_lea.hbm %s1471_s7, 256 }
 0x2d5   : > { %p948_p13 = scmp.ne.s32.totalorder %s1407_s13, %s947_s21  ;;  %p952_p2 = scmp.lt.u32.totalorder %s1407_s13, %s1471_s7 }
 0x2d6   : > { %p953_p7 = scmp.lt.u32.totalorder %s951_s11, %s947_s21  ;;  %p955_p8 = scmp.lt.u32.totalorder %s947_s21, %s1407_s13 }
 0x2d7   : > { %p949_p10 = pnand %p948_p13, %p1505_p1 }
 0x2d8   : > { %p954_p4 = por %p953_p7, %p952_p2 }
 0x2d9   : > { %p950_p0 = pneg %p949_p10 }
 0x2da   : > { %p956_p3 = por %p955_p8, %p954_p4 }
 0x2dc   : > { %p957_p9 = pnand %p956_p3, %p950_p0 }
 0x2de   : > { %960 = shalt.err (!%p957_p9)
}
 0x2df   : > { %739 = dma.vmem_to_hbm [thread:$0]  (%p1505_p1), %s505_s17, 128, %s1407_s13, %s491_s9  }
 0x2e0 PF: > { %s1506_s28 = sld [smem:[#allocation18_spill]]  ;;  %s1507_s14 = sld [smem:[#allocation16_spill]] }
 0x2e1   : > { %s1508_s29 = sld [smem:[#allocation19_spill]] }
 0x2e6   : > { %p753_p12 = scmp.ge.s32.totalorder %s1506_s28, 2  ;;  %s516_s25 = sand.u32 1, %s1507_s14  }
 0x2e7   : > { %p1509_p5 = scmp.ne.s32.totalorder %s1508_s29, 0  ;;  %s517_s2 = scalar_lea.sflag [#allocation8], %s516_s25 }
 0x2e9   : > { %p749_p11 = pnand %p753_p12, %p1509_p5 }
 0x2eb   : > { %1016 = dma.done.wait (!%p749_p11), %s517_s2, 128  }
 0x2ec   : > { %1018 = vsyncadd (!%p749_p11), %s517_s2, 4294967168  ;;  %s34_s12 = sadd.s32 1, %s1506_s28   ;;  %s1510_s20 = sld [smem:[#allocation17_spill]] }
 0x2ed   : > { %p31_p6 = scmp.ge.s32.totalorder %s34_s12, 10   ;;  %s1511_s10 = sld [smem:[#allocation20_spill]] }
 0x2ee   : > { %s1512_s13 = sld [smem:[#allocation21_spill]]  ;;  %s1513_s0 = smov %s1025_s1 }
 0x2ef   : > { %s1514_s1 = smov %s1029_s16  ;;  %s1515_s16 = smov %s1291_s24 }
 0x2f0   : > { %s1516_s17 = smov %s1037_s18  ;;  %s1517_s18 = smov %s1041_s19 }
 0x2f1   : > { %s1518_s19 = smov %s1300_s22  ;;  %s1519_s21 = smov %s1057_s23 }
 0x2f2   : > { %s1522_s24 = smov %s34_s12  ;;  %33 = sbr.rel (!%p31_p6) target bundleno = 33 (0x21), region = 119 }
 0x2f3   : > { %s1520_s22 = smov %s1511_s10 }
 0x2f4   : > { %s1521_s23 = smov %s1512_s13 }
 0x2f9   :  { %522 = vsyncpa [#allocation7], 1 }
 0x2fa   :  { %524 = vsyncpa [#allocation7 + $0x1], 1 }
 0x2fb   :  { %525 = vsyncpa [#allocation10], 1 }
 0x2fc   :  { %527 = vsyncpa [#allocation10 + $0x1], 1 }
 0x2fd   :  { %528 = vsyncpa [#allocation8], 1 }
 0x2fe   :  { %530 = vsyncpa [#allocation8 + $0x1], 1 }

</bundles_post_ra>
